<compile_context>
chip_gen: v6e
topology: v6e:2x2x1
jax: 0.10.0
libtpu: 0.0.40
codegen_flags: <defaults>
</compile_context>

<pallas_src>
import functools

import jax
import jax.numpy as jnp
from jax.experimental import pallas as pl
from jax.experimental.pallas import tpu as pltpu


def _round_up(x, m):
    return ((x + m - 1) // m) * m


def _vmem_capacity_bytes():
    """Physical per-core VMEM; conservative fallback (v7x = 64 MiB)."""
    try:
        cap = getattr(pltpu.get_tpu_info(), "vmem_capacity_bytes", None)
        if cap:
            return int(cap)
    except Exception:
        pass
    return 64 << 20


def _linear_kernel(x_ref, w_ref, b_ref, o_ref, *, compute_dtype):
    # Full-K tile: one MXU pass per (tm, tn) tile.  x is cast to the compute
    # dtype *inside* the kernel (avoids an extra HBM pass over x).
    x = x_ref[...].astype(compute_dtype)
    acc = jnp.dot(x, w_ref[...], preferred_element_type=jnp.float32)
    o_ref[...] = (acc + b_ref[...]).astype(o_ref.dtype)


def _linear_kernel_ktiled(x_ref, w_ref, b_ref, o_ref, acc_ref, *, compute_dtype):
    # K-tiled variant: f32 accumulator in VMEM, init / finalize via pl.when.
    k = pl.program_id(2)

    @pl.when(k == 0)
    def _():
        acc_ref[...] = jnp.zeros_like(acc_ref)

    x = x_ref[...].astype(compute_dtype)
    acc_ref[...] += jnp.dot(x, w_ref[...], preferred_element_type=jnp.float32)

    @pl.when(k == pl.num_programs(2) - 1)
    def _():
        o_ref[...] = (acc_ref[...] + b_ref[...]).astype(o_ref.dtype)


def pallas_linear(x2d, w, b, *, compute_dtype=jnp.bfloat16):
    """x2d: (M, K); w: (K, N); b: (N,) -> (M, N) in x2d.dtype.

    Pass compute_dtype=jnp.float32 for full f32 parity with a PyTorch Linear.
    """
    M, K = x2d.shape
    Kw, N = w.shape
    assert K == Kw and b.shape == (N,)
    out_dtype = x2d.dtype

    x_bytes = jnp.dtype(x2d.dtype).itemsize      # x lives in VMEM in its own dtype
    w_bytes = jnp.dtype(compute_dtype).itemsize
    out_bytes = jnp.dtype(out_dtype).itemsize
    sub = 16 if min(x_bytes, out_bytes) == 2 else 8   # sublane multiple

    # ---- chip-aware VMEM policy -------------------------------------------
    vmem_cap = _vmem_capacity_bytes()
    budget = (vmem_cap * 3) // 4          # 48 MiB on v7x, 96 MiB on v5e/v6e

    # Lane-dense padding: K and N up to multiples of 128 (zero-pad is exact).
    k_pad = _round_up(K, 128)
    n_pad = _round_up(N, 128)

    def vmem_est(tm_, tn_, kt_, acc_):
        return (2 * tm_ * kt_ * x_bytes            # x tiles (double-buffered)
                + 2 * kt_ * tn_ * w_bytes          # weight tiles
                + 2 * tm_ * tn_ * out_bytes        # out tiles
                + 2 * tn_ * 4                      # bias
                + (tm_ * tn_ * 4 if acc_ else 0))  # f32 accumulator scratch

    # N tiling: keep the whole weight resident when it is small (the common
    # TimeDistributed-linear case) -> x read from HBM exactly once, W once.
    if 2 * k_pad * n_pad * w_bytes <= budget // 4:
        tn = n_pad
    else:
        tn = 512 if n_pad % 512 == 0 else (256 if n_pad % 256 == 0 else 128)

    # Row tile: as large as the budget allows (amortizes ~0.35us/step).
    tm = 1024 if budget >= (80 << 20) else 512
    tm = max(sub, min(_round_up(M, sub), _round_up(tm, sub)))

    kt = k_pad
    while vmem_est(tm, tn, kt, False) > budget and tm > 256:
        tm = max(256, _round_up(tm // 2, sub))
    if vmem_est(tm, tn, kt, False) > budget and tn > 128:
        tn = 256 if (n_pad % 256 == 0
                     and vmem_est(tm, 256, kt, False) <= budget) else 128
    if vmem_est(tm, tn, kt, False) > budget:
        # Very large F_in: bound VMEM with a K grid axis + accumulator.
        kt = 128
        while kt * 2 < K and vmem_est(tm, tn, kt * 2, True) <= budget:
            kt *= 2
        k_pad = _round_up(K, kt)

    m_pad = _round_up(M, tm)
    nm, nn, nk = m_pad // tm, n_pad // tn, k_pad // kt
    est = vmem_est(tm, tn, kt, nk > 1)
    vmem_limit = int(min((vmem_cap * 7) // 8, max(2 * est, 32 << 20)))

    # ---- wrapper-side padding (no dtype cast of x: cast happens in-kernel) --
    x_c = x2d
    if m_pad != M or k_pad != K:
        x_c = jnp.pad(x_c, ((0, m_pad - M), (0, k_pad - K)))
    w_c = w.astype(compute_dtype)
    if k_pad != K or n_pad != N:
        w_c = jnp.pad(w_c, ((0, k_pad - K), (0, n_pad - N)))
    b_c = b.astype(jnp.float32)
    if n_pad != N:
        b_c = jnp.pad(b_c, (0, n_pad - N))
    b2d = b_c.reshape(1, n_pad)

    # ---- grid / specs -------------------------------------------------------
    # M (large) outermost, N inner: x's block index is constant across the
    # inner axis, so the big activation is streamed once; only the small
    # K x tn weight tile is re-fetched (and not at all when nn == 1).
    if nk == 1:
        kernel = functools.partial(_linear_kernel, compute_dtype=compute_dtype)
        grid = (nm, nn)
        in_specs = [
            pl.BlockSpec((tm, k_pad), lambda i, j: (i, 0)),   # x row tile (resident over j)
            pl.BlockSpec((k_pad, tn), lambda i, j: (0, j)),   # weight column tile
            pl.BlockSpec((1, tn), lambda i, j: (0, j)),       # bias
        ]
        out_specs = pl.BlockSpec((tm, tn), lambda i, j: (i, j))
        scratch_shapes = ()
        dim_sem = ("parallel", "parallel")
    else:
        kernel = functools.partial(_linear_kernel_ktiled,
                                   compute_dtype=compute_dtype)
        grid = (nm, nn, nk)
        in_specs = [
            pl.BlockSpec((tm, kt), lambda i, j, k: (i, k)),
            pl.BlockSpec((kt, tn), lambda i, j, k: (k, j)),
            pl.BlockSpec((1, tn), lambda i, j, k: (0, j)),
        ]
        out_specs = pl.BlockSpec((tm, tn), lambda i, j, k: (i, j))
        scratch_shapes = (pltpu.VMEM((tm, tn), jnp.float32),)
        dim_sem = ("parallel", "parallel", "arbitrary")

    # Accurate HBM-traffic hint for the chosen grid order.
    x_reads = 1 if nk == 1 else nn
    w_reads = 1 if nn == 1 else nm
    cost = pl.CostEstimate(
        flops=2 * M * K * N,
        transcendentals=0,
        bytes_accessed=(x_reads * m_pad * k_pad * x_bytes
                        + w_reads * k_pad * n_pad * w_bytes
                        + n_pad * 4
                        + m_pad * n_pad * out_bytes),
    )

    out = pl.pallas_call(
        kernel,
        out_shape=jax.ShapeDtypeStruct((m_pad, n_pad), out_dtype),
        grid_spec=pltpu.PrefetchScalarGridSpec(
            num_scalar_prefetch=0,
            grid=grid,
            in_specs=in_specs,
            out_specs=out_specs,
            scratch_shapes=scratch_shapes,
        ),
        compiler_params=pltpu.CompilerParams(
            dimension_semantics=dim_sem,
            vmem_limit_bytes=vmem_limit,
        ),
        cost_estimate=cost,
    )(x_c, w_c, b2d)

    # Strip the M / N padding.
    if m_pad != M or n_pad != N:
        out = out[:M, :N]
    return out


def time_distributed_linear(x, w, b, *, use_pallas=None, **kwargs):
    """TimeDistributed(Linear) forward.

    x: (T, B, F_in)  ->  (T, B, F_out)

    Mirrors the PyTorch module:
      batch_shape = x.shape[:2]
      flat = x.reshape(-1, *x.shape[2:])
      out  = inner(flat)            # <- Pallas kernel (or jnp for tiny sizes)
      return out.reshape(*batch_shape, *out.shape[1:])
    """
    batch_shape = x.shape[:2]
    flat = x.reshape((-1,) + x.shape[2:])
    M, K = flat.shape
    N = w.shape[1]

    if use_pallas is None:
        # Tiny problems: fixed pallas_call launch cost dominates; let XLA fuse.
        use_pallas = (2 * M * K * N) >= (1 << 21)

    if use_pallas:
        out_flat = pallas_linear(flat, w, b, **kwargs)
    else:
        out_flat = (jnp.dot(flat, w, preferred_element_type=jnp.float32)
                    + b).astype(x.dtype)
    return out_flat.reshape(batch_shape + out_flat.shape[1:])


if __name__ == "__main__":
    # Small shapes: time T=8, batch B=2, in_features=32, out_features=32.
    T, B, F_IN, F_OUT = 8, 2, 32, 32

    key = jax.random.PRNGKey(0)
    kx, kw, kb = jax.random.split(key, 3)

    x = jax.random.normal(kx, (T, B, F_IN), dtype=jnp.float32)
    # Deterministic synthetic parameters (nn.Linear(F_IN, F_OUT) shapes).
    # Stored as (F_IN, F_OUT) == PyTorch weight.T so the kernel computes x @ W.
    w = (jax.random.normal(kw, (F_IN, F_OUT), dtype=jnp.float32)
         * (1.0 / jnp.sqrt(F_IN)))
    bias = jax.random.normal(kb, (F_OUT,), dtype=jnp.float32) * 0.01

    # Force the Pallas path so the kernel is exercised even at this tiny size
    # (the default dispatch would fall back to a fused jnp.dot here).
    out = time_distributed_linear(x, w, bias, use_pallas=True)
    out = jax.block_until_ready(out)

    # Reference check in plain JAX (same semantics as the PyTorch module).
    ref_f32 = (x.reshape(-1, F_IN) @ w + bias).reshape(T, B, F_OUT)
    # Exact-math reference for bf16-rounded inputs with f32 accumulation.
    ref_bf16 = (x.reshape(-1, F_IN).astype(jnp.bfloat16).astype(jnp.float32)
                @ w.astype(jnp.bfloat16).astype(jnp.float32)
                + bias).reshape(T, B, F_OUT)

    assert out.shape == (T, B, F_OUT)
    assert out.dtype == x.dtype
    assert jnp.allclose(out, ref_bf16, atol=1e-3, rtol=1e-3)
    assert jnp.allclose(out, ref_f32, atol=5e-2, rtol=5e-2)

    # Also check the default (auto-dispatch) path gives the same answer.
    out_auto = jax.block_until_ready(time_distributed_linear(x, w, bias))
    assert jnp.allclose(out_auto, ref_f32, atol=5e-2, rtol=5e-2)

    print("KERNEL_OK")
</pallas_src>

<mosaic_0001>
module attributes {stable_mosaic.version = 11 : i64} {
  func.func @_linear_kernel(%arg0: i32, %arg1: i32, %arg2: memref<16x128xf32, #tpu.memory_space<vmem>>, %arg3: memref<128x128xbf16, #tpu.memory_space<vmem>>, %arg4: memref<1x128xf32, #tpu.memory_space<vmem>>, %arg5: memref<16x128xf32, #tpu.memory_space<vmem>>) attributes {dimension_semantics = [#tpu.dimension_semantics<parallel>, #tpu.dimension_semantics<parallel>], iteration_bounds = array<i64: 1, 1>, scalar_prefetch = 0 : i64, scratch_operands = 0 : i64, tpu.core_type = #tpu.core_type<tc>, window_params = [{transform_indices = @transform_0, window_bounds = array<i64: 16, 128>}, {transform_indices = @transform_1, window_bounds = array<i64: 128, 128>}, {transform_indices = @transform_2, window_bounds = array<i64: 1, 128>}, {transform_indices = @transform_3, window_bounds = array<i64: 16, 128>}]} {
    %c0 = arith.constant 0 : index
    %c0_0 = arith.constant 0 : index
    %0 = vector.load %arg2[%c0, %c0_0] : memref<16x128xf32, #tpu.memory_space<vmem>>, vector<16x128xf32>
    %1 = arith.truncf %0 : vector<16x128xf32> to vector<16x128xbf16>
    %c0_1 = arith.constant 0 : index
    %c0_2 = arith.constant 0 : index
    %2 = vector.load %arg3[%c0_1, %c0_2] : memref<128x128xbf16, #tpu.memory_space<vmem>>, vector<128x128xbf16>
    %cst = arith.constant dense<0.000000e+00> : vector<16x128xf32>
    %3 = tpu.matmul %1, %2, %cst {dimension_numbers = #tpu.dot_dimension_numbers<[1], [0], [0], [1], [0, 0, 1, 1], [], []>} : vector<16x128xbf16>, vector<128x128xbf16>, vector<16x128xf32> -> vector<16x128xf32>
    %c0_3 = arith.constant 0 : index
    %c0_4 = arith.constant 0 : index
    %4 = vector.load %arg4[%c0_3, %c0_4] : memref<1x128xf32, #tpu.memory_space<vmem>>, vector<1x128xf32>
    %5 = vector.broadcast %4 : vector<1x128xf32> to vector<16x128xf32>
    %6 = arith.addf %3, %5 : vector<16x128xf32>
    %c0_5 = arith.constant 0 : index
    %c0_6 = arith.constant 0 : index
    %7 = vector.load %arg5[%c0_5, %c0_6] : memref<16x128xf32, #tpu.memory_space<vmem>>, vector<16x128xf32>
    tpu.vector_store %arg5[%c0_5, %c0_6], %6 {strides = array<i32>} : memref<16x128xf32, #tpu.memory_space<vmem>>, vector<16x128xf32>,
    return
  }
  func.func @transform_0(%arg0: i32, %arg1: i32) -> (i32, i32) {
    %c0_i32 = arith.constant 0 : i32
    %c0_i32_0 = arith.constant 0 : i32
    return %arg0, %c0_i32 : i32, i32
  }
  func.func @transform_1(%arg0: i32, %arg1: i32) -> (i32, i32) {
    %c0_i32 = arith.constant 0 : i32
    %c0_i32_0 = arith.constant 0 : i32
    return %c0_i32, %arg1 : i32, i32
  }
  func.func @transform_2(%arg0: i32, %arg1: i32) -> (i32, i32) {
    %c0_i32 = arith.constant 0 : i32
    %c0_i32_0 = arith.constant 0 : i32
    return %c0_i32, %arg1 : i32, i32
  }
  func.func @transform_3(%arg0: i32, %arg1: i32) -> (i32, i32) {
    %c0_i32 = arith.constant 0 : i32
    return %arg0, %arg1 : i32, i32
  }
}

</mosaic_0001>

<bundles_post_ra>
// kernel: tpu_custom_call.1
= control target key start
LH: loop header
LB: loop body
LE: loop exit
PB: predicated region body
PF: predicated region fallthrough
CT: control target
= control target key end

     0   :  { %8 = vsyncpa [#allocation3], 0  ;;  %s347_s0 = inlined_call_operand.hbm [shape: f32[16,128], index: 0, kind: input, shape index: {}]   ;;  %s348_s1 = inlined_call_operand.hbm [shape: bf16[128,128], index: 1, kind: input, shape index: {}]   ;;  %s349_s2 = inlined_call_operand.vmem [shape: f32[1,128], index: 2, kind: input, shape index: {}]   ;;  %s350_s3 = inlined_call_operand.hbm [shape: f32[16,128], index: 3, kind: output, shape index: {}]  }
   0x1   :  { %9 = vsyncpa [#allocation6], 0 }
   0x2   :  { %10 = vsyncpa [#allocation4], 0  ;;  %s300_s12 = smov [#allocation2]  }
   0x3   :  { %s16_s13 = sshll.u32 %s300_s12, 4  ;;  %s17_s13 = int_to_ptr.vmem [resolvable:$true] %s16_s13 }
   0x4   :  { %s242_s14 = scalar_lea.vmem %s17_s13, 256  ;;  %p247_p1 = scmp.lt.s32.totalorder %s17_s13, %s17_s13 }
   0x5   :  { %p243_p0 = scmp.ne.s32.totalorder %s17_s13, %s242_s14  ;;  %p248_p2 = scmp.lt.s32.totalorder %s242_s14, %s242_s14 }
   0x7   :  { %p249_p3 = por %p248_p2, %p247_p1 }
   0x9   :  { %p250_p4 = pnand %p249_p3, %p243_p0 }
   0xb   :  { %253 = shalt.err (!%p250_p4)
}
   0xc   :  { %s301_s15 = smov 128   ;;  %s302_s16 = smov 8  }
   0xd   :  { %22 = dma.hbm_to_vmem [thread:$0]  %s347_s0, 256, %s17_s13, [#allocation3], %s301_s15, %s301_s15, %s302_s16  }
   0xe   :  { %s303_s19 = smov [#allocation5]  }
   0xf   :  { %s28_s20 = sshll.u32 %s303_s19, 4  ;;  %s29_s20 = int_to_ptr.vmem [resolvable:$true] %s28_s20 }
  0x10   :  { %s262_s21 = scalar_lea.vmem %s29_s20, 1024  ;;  %p267_p6 = scmp.lt.s32.totalorder %s29_s20, %s29_s20 }
  0x11   :  { %p263_p5 = scmp.ne.s32.totalorder %s29_s20, %s262_s21  ;;  %p268_p7 = scmp.lt.s32.totalorder %s262_s21, %s262_s21 }
  0x13   :  { %p269_p8 = por %p268_p7, %p267_p6 }
  0x15   :  { %p270_p9 = pnand %p269_p8, %p263_p5 }
  0x17   :  { %273 = shalt.err (!%p270_p9)
}
  0x18   :  { %s304_s22 = smov 64   ;;  %s305_s23 = smov 4  }
  0x19   :  { %34 = dma.hbm_to_vmem [thread:$0]  %s348_s1, 1024, %s29_s20, [#allocation6], %s304_s22, %s304_s22, %s305_s23  }
  0x1a   :  { %294 = dma.done.wait [#allocation3], 256  }
  0x1b   :  { %295 = vsyncadd [#allocation3], 4294967040 }
  0x1c   :  { %296 = dma.done.wait [#allocation6], 1024  }
  0x1d   :  { %297 = vsyncadd [#allocation6], 4294966272  ;;  %v306_v0 = vmov 0.0   ;;  %vm307_vm0 = vmmov 0   ;;  %v226_v1 = vld [vmem:[#allocation5 + $0x38] sm:$0xff]   ;;  %v227_v2 = vld [vmem:[#allocation5 + $0x30] sm:$0xff]  }
  0x1e   :  { %197 = vmatprep.subr.bf16.mxu0 %v306_v0  ;;  %213 = vmatprep.mubr.msk.bf16.mxu0 %vm307_vm0, %v306_v0  ;;  %v228_v3 = vld [vmem:[#allocation5 + $0x28] sm:$0xff]   ;;  %v229_v4 = vld [vmem:[#allocation5 + $0x20] sm:$0xff]   ;;  %v230_v5 = vld [vmem:[#allocation5 + $0x18] sm:$0xff]   ;;  %s308_s26 = smov [#allocation7]  }
  0x1f   :  { %198 = vmatpush3.bf16.msra.mxu0 %v226_v1  ;;  %v231_v6 = vld [vmem:[#allocation5 + $0x10] sm:$0xff]   ;;  %v232_v7 = vld [vmem:[#allocation5 + $0x8] sm:$0xff]   ;;  %v233_v8 = vld [vmem:[#allocation5] sm:$0xff]   ;;  %s166_s27 = sshll.u32 %s308_s26, 4  ;;  %s167_s27 = int_to_ptr.vmem [resolvable:$true] %s166_s27 }
  0x20   :  { %199 = vmatprep.subr.bf16.mxu0 %v306_v0  ;;  %v44_v9 = vld [vmem:[#allocation2] sm:$0xff]  ;;  %v45_v10 = vld [vmem:[#allocation2 + $0x8] sm:$0xff]  ;;  %s274_s28 = scalar_lea.vmem %s167_s27, 256  ;;  %p279_p11 = scmp.lt.s32.totalorder %s167_s27, %s167_s27 }
  0x21   :  { %v46_v11 = vpack.c.bf16 %v45_v10, %v44_v9  ;;  %v179_v12 = vld [vmem:[%s349_s2] ss:$0 sm:$0xff]  ;;  %p275_p10 = scmp.ne.s32.totalorder %s167_s27, %s274_s28  ;;  %p280_p12 = scmp.lt.s32.totalorder %s274_s28, %s274_s28 }
  0x23   :  { %200 = vmatpush3.bf16.msra.mxu0 %v227_v2  ;;  %p281_p13 = por %p280_p12, %p279_p11 }
  0x24   :  { %201 = vmatprep.subr.bf16.mxu0 %v306_v0 }
  0x25   :  { %p282_p0 = pnand %p281_p13, %p275_p10 }
  0x27   :  { %202 = vmatpush3.bf16.msra.mxu0 %v228_v3 }
  0x28   :  { %203 = vmatprep.subr.bf16.mxu0 %v306_v0 }
  0x2b   :  { %204 = vmatpush3.bf16.msra.mxu0 %v229_v4 }
  0x2c   :  { %205 = vmatprep.subr.bf16.mxu0 %v306_v0 }
  0x2f   :  { %206 = vmatpush3.bf16.msra.mxu0 %v230_v5 }
  0x30   :  { %207 = vmatprep.subr.bf16.mxu0 %v306_v0 }
  0x33   :  { %208 = vmatpush3.bf16.msra.mxu0 %v231_v6 }
  0x34   :  { %209 = vmatprep.subr.bf16.mxu0 %v306_v0 }
  0x37   :  { %210 = vmatpush3.bf16.msra.mxu0 %v232_v7 }
  0x38   :  { %211 = vmatprep.subr.bf16.mxu0 %v306_v0 }
  0x3b   :  { %212 = vmatpush3.bf16.msra.mxu0 %v233_v8 }
  0x3e   :  { %214 = vmatmul.mubr.bf16.vlgmr.msra.gmra.mxu0 %v46_v11 }
  0xfe   :  { %v152_v13 = vpop.f32.mrf.mxu0 }
  0xff   :  { %v153_v14 = vadd.f32 %v179_v12, %v152_v13 }
 0x100   :  { %v215_v15 = vpop.f32.mrf.mxu0 }
 0x101   :  { %159 = vst [vmem:[#allocation7] sm:$0xff] %v153_v14 }
 0x102   :  { %v155_v16 = vpop.f32.mrf.mxu0 }
 0x103   :  { %v156_v17 = vadd.f32 %v179_v12, %v155_v16 }
 0x104   :  { %v216_v18 = vpop.f32.mrf.mxu0 }
 0x105   :  { %160 = vst [vmem:[#allocation7 + $0x8] sm:$0xff] %v156_v17 }
 0x106   :  { %285 = shalt.err (!%p282_p0)
}
 0x107   :  { %172 = dma.vmem_to_hbm [thread:$0]  %s167_s27, 256, %s350_s3, [#allocation4], %s301_s15, %s301_s15, %s302_s16  }
 0x108   :  { %298 = dma.done.wait [#allocation4], 256  }
 0x109   :  { %299 = vsyncadd [#allocation4], 4294967040 }
 0x10a   :  { %176 = vsyncpa [#allocation3], 1 }
 0x10b   :  { %177 = vsyncpa [#allocation6], 1 }
 0x10c   :  { %178 = vsyncpa [#allocation4], 1 }

</bundles_post_ra>
